<compile_context>
chip_gen: v6e
topology: v6e:2x2x1
jax: 0.10.0
libtpu: 0.0.40
codegen_flags: <defaults>
</compile_context>

<pallas_src>
import functools

import jax
import jax.numpy as jnp
from jax.experimental import pallas as pl
from jax.experimental.pallas import tpu as pltpu


def _ln_channel_kernel(x_ref, w_ref, b_ref, o_ref, *, eps):
    # x_ref: (Bt, C, T_HW) tile in VMEM; w_ref / b_ref: (1, C, 1) resident params.
    x = x_ref[...].astype(jnp.float32)
    w = w_ref[...].astype(jnp.float32)            # broadcast over batch & lanes
    b = b_ref[...].astype(jnp.float32)

    u = jnp.mean(x, axis=1, keepdims=True)        # mean over channels (sublanes)
    d = x - u
    s = jnp.mean(d * d, axis=1, keepdims=True)    # biased variance (matches torch)
    y = d * jax.lax.rsqrt(s + eps)
    o_ref[...] = (w * y + b).astype(o_ref.dtype)


def _choose_tiles(B, C, HW, itemsize):
    """Pick (Bt, t_hw) from a dtype-aware VMEM byte budget.

    Per (channel, lane) column of a block the pipelined working set is about
      2 x input buffer + 2 x output buffer  -> 4 * itemsize bytes
      ~3 f32 intermediates inside the body  -> 12 bytes
    Target ~12 MiB total so the kernel fits comfortably under the 32 MiB
    scoped limit requested below on every generation (v7x: 64 MiB physical /
    32 MiB scoped default; v5e: 16 MiB scoped default, raised explicitly).
    """
    budget_bytes = 12 << 20
    c_pad = -(-C // 8) * 8                         # sublane padding in VMEM
    per_col_bytes = 4 * itemsize + 12
    cols_budget = max(128, budget_bytes // (c_pad * per_col_bytes))

    hw_lanes = -(-HW // 128) * 128                 # lane-padded width of one row
    if hw_lanes <= cols_budget:
        # Whole spatial row per step.  Block last dim == full array dim, so no
        # 128-divisibility requirement and no ragged masking at all.
        t_hw = HW
        # Small C / HW: enlarge the per-step working set by blocking over
        # batch (largest divisor of B that still fits the budget).
        max_bt = min(B, max(1, cols_budget // hw_lanes))
        bt = 1
        for cand in range(max_bt, 0, -1):
            if B % cand == 0:
                bt = cand
                break
    else:
        # Spatial tiling: biggest 128-aligned tile under budget.  The final
        # block of each row may be ragged; Pallas masks those stores.
        t_hw = max(128, (cols_budget // 128) * 128)
        bt = 1
    return bt, t_hw


def _param_spec(C, single_buffered):
    """(1, C, 1) resident parameter spec (constant index_map)."""
    idx = lambda bb, ss: (0, 0, 0)
    if single_buffered:
        # Params never change across grid steps; one buffer is enough.
        return pl.BlockSpec((1, C, 1), idx, pipeline_mode=pl.Buffered(1))
    return pl.BlockSpec((1, C, 1), idx)


def layer_norm_channel(x, weight, bias, eps=1e-5, *, tile_override=None):
    """x: [B, C, H, W] (NCHW, matching the PyTorch module). Returns same shape."""
    B, C, H, W = x.shape
    HW = H * W
    itemsize = jnp.dtype(x.dtype).itemsize

    if tile_override is not None:
        bt, t_hw = tile_override
    else:
        bt, t_hw = _choose_tiles(B, C, HW, itemsize)
    assert B % bt == 0, "batch block must divide B"
    n_s = pl.cdiv(HW, t_hw)

    # No wrapper-side padding / slicing: HBM traffic is exactly read-x + write-out.
    x3 = x.reshape(B, C, HW)
    w3 = weight.reshape(1, C, 1)
    b3 = bias.reshape(1, C, 1)

    kernel = functools.partial(_ln_channel_kernel, eps=eps)

    # Explicit VMEM budget: >= 32 MiB (above v5e's 16 MiB scoped default, within
    # v7x's physical 64 MiB), or larger if a huge C forces a bigger footprint.
    c_pad = -(-C // 8) * 8
    t_lanes = -(-t_hw // 128) * 128
    est_bytes = bt * c_pad * t_lanes * (4 * itemsize + 12) + 4 * c_pad * 128 * 4
    vmem_limit = max(32 << 20, int(1.5 * est_bytes))

    cost = pl.CostEstimate(
        flops=int(7 * B * C * HW),
        transcendentals=int(B * HW),               # one rsqrt per (b, h, w) column
        bytes_accessed=int(2 * B * C * HW * itemsize
                           + weight.size * jnp.dtype(weight.dtype).itemsize
                           + bias.size * jnp.dtype(bias.dtype).itemsize),
    )

    x_spec = pl.BlockSpec((bt, C, t_hw), lambda bb, ss: (bb, 0, ss))
    o_spec = pl.BlockSpec((bt, C, t_hw), lambda bb, ss: (bb, 0, ss))

    def run(single_buffered_params):
        return pl.pallas_call(
            kernel,
            out_shape=jax.ShapeDtypeStruct((B, C, HW), x.dtype),
            grid_spec=pltpu.PrefetchScalarGridSpec(
                num_scalar_prefetch=0,
                grid=(B // bt, n_s),
                in_specs=[
                    x_spec,
                    _param_spec(C, single_buffered_params),
                    _param_spec(C, single_buffered_params),
                ],
                out_specs=o_spec,
            ),
            compiler_params=pltpu.CompilerParams(
                # All blocks are independent -> both axes parallel (lets v7x's
                # two TensorCores split the work).  If a v7x profile ever shows
                # an idle core, switch the larger axis to pltpu.CORE_PARALLEL.
                dimension_semantics=("parallel", "parallel"),
                vmem_limit_bytes=vmem_limit,
            ),
            cost_estimate=cost,
        )(x3, w3, b3)

    try:
        out3 = run(True)
    except Exception:
        # Single-buffered resident params are only a minor VMEM optimization;
        # fall back to default double-buffering if this JAX/Mosaic build
        # rejects pipeline_mode=pl.Buffered(1).
        out3 = run(False)

    return out3.reshape(B, C, H, W)


def _reference(x, weight, bias, eps=1e-5):
    u = jnp.mean(x, axis=1, keepdims=True)
    s = jnp.mean((x - u) ** 2, axis=1, keepdims=True)
    y = (x - u) / jnp.sqrt(s + eps)
    return weight[None, :, None, None] * y + bias[None, :, None, None]


if __name__ == "__main__":
    k0, k1, k2, k3 = jax.random.split(jax.random.PRNGKey(0), 4)

    # Main check: shapes implied by the module (NCHW), batch=2, channels=4.
    B, C, H, W = 2, 4, 16, 16
    x = jax.random.normal(k0, (B, C, H, W), dtype=jnp.float32)
    weight = jax.random.normal(k1, (C,), dtype=jnp.float32)
    bias = jax.random.normal(k2, (C,), dtype=jnp.float32)

    out = layer_norm_channel(x, weight, bias, eps=1e-5)
    out = jax.block_until_ready(out)
    ref = _reference(x, weight, bias, eps=1e-5)
    assert out.shape == (B, C, H, W)
    assert jnp.allclose(out, ref, atol=1e-5, rtol=1e-5), "mismatch vs reference"

    # Extra check: unaligned spatial extent with forced spatial tiling so the
    # ragged (masked) final-block path is exercised on hardware.
    H2, W2 = 16, 10                        # HW = 160 -> one 128 block + ragged 32
    x2 = jax.random.normal(k3, (B, C, H2, W2), dtype=jnp.float32)
    out2 = layer_norm_channel(x2, weight, bias, eps=1e-5, tile_override=(1, 128))
    out2 = jax.block_until_ready(out2)
    ref2 = _reference(x2, weight, bias, eps=1e-5)
    assert jnp.allclose(out2, ref2, atol=1e-5, rtol=1e-5), "mismatch (ragged tile)"

    print("KERNEL_OK")
</pallas_src>

<mosaic_0001>
module attributes {stable_mosaic.version = 11 : i64} {
  func.func @_ln_channel_kernel(%arg0: i32, %arg1: i32, %arg2: memref<2x4x256xf32, #tpu.memory_space<vmem>>, %arg3: memref<1x4x1xf32, #tpu.memory_space<vmem>>, %arg4: memref<1x4x1xf32, #tpu.memory_space<vmem>>, %arg5: memref<2x4x256xf32, #tpu.memory_space<vmem>>) attributes {dimension_semantics = [#tpu.dimension_semantics<parallel>, #tpu.dimension_semantics<parallel>], iteration_bounds = array<i64: 1, 1>, scalar_prefetch = 0 : i64, scratch_operands = 0 : i64, tpu.core_type = #tpu.core_type<tc>, window_params = [{transform_indices = @transform_0, window_bounds = array<i64: 2, 4, 256>}, {pipeline_mode = #tpu.pipeline_mode<synchronous>, transform_indices = @transform_1, window_bounds = array<i64: 1, 4, 1>}, {pipeline_mode = #tpu.pipeline_mode<synchronous>, transform_indices = @transform_2, window_bounds = array<i64: 1, 4, 1>}, {transform_indices = @transform_3, window_bounds = array<i64: 2, 4, 256>}]} {
    %c0 = arith.constant 0 : index
    %c0_0 = arith.constant 0 : index
    %c0_1 = arith.constant 0 : index
    %0 = vector.load %arg2[%c0, %c0_0, %c0_1] : memref<2x4x256xf32, #tpu.memory_space<vmem>>, vector<2x4x256xf32>
    %c0_2 = arith.constant 0 : index
    %c0_3 = arith.constant 0 : index
    %c0_4 = arith.constant 0 : index
    %1 = vector.load %arg3[%c0_2, %c0_3, %c0_4] : memref<1x4x1xf32, #tpu.memory_space<vmem>>, vector<1x4x1xf32>
    %c0_5 = arith.constant 0 : index
    %c0_6 = arith.constant 0 : index
    %c0_7 = arith.constant 0 : index
    %2 = vector.load %arg4[%c0_5, %c0_6, %c0_7] : memref<1x4x1xf32, #tpu.memory_space<vmem>>, vector<1x4x1xf32>
    %cst = arith.constant dense<0.000000e+00> : vector<2x256xf32>
    %3 = vector.multi_reduction <add>, %0, %cst [1] : vector<2x4x256xf32> to vector<2x256xf32>
    %4 = vector.shape_cast %3 : vector<2x256xf32> to vector<2x1x256xf32>
    %cst_8 = arith.constant 4.000000e+00 : f32
    %5 = vector.broadcast %cst_8 : f32 to vector<2x1x256xf32>
    %6 = arith.divf %4, %5 : vector<2x1x256xf32>
    %7 = vector.broadcast %6 : vector<2x1x256xf32> to vector<2x4x256xf32>
    %8 = arith.subf %0, %7 : vector<2x4x256xf32>
    %9 = arith.mulf %8, %8 : vector<2x4x256xf32>
    %cst_9 = arith.constant dense<0.000000e+00> : vector<2x256xf32>
    %10 = vector.multi_reduction <add>, %9, %cst_9 [1] : vector<2x4x256xf32> to vector<2x256xf32>
    %11 = vector.shape_cast %10 : vector<2x256xf32> to vector<2x1x256xf32>
    %cst_10 = arith.constant 4.000000e+00 : f32
    %12 = vector.broadcast %cst_10 : f32 to vector<2x1x256xf32>
    %13 = arith.divf %11, %12 : vector<2x1x256xf32>
    %cst_11 = arith.constant 9.99999974E-6 : f32
    %14 = vector.broadcast %cst_11 : f32 to vector<2x1x256xf32>
    %15 = arith.addf %13, %14 : vector<2x1x256xf32>
    %16 = math.rsqrt %15 : vector<2x1x256xf32>
    %17 = vector.broadcast %16 : vector<2x1x256xf32> to vector<2x4x256xf32>
    %18 = arith.mulf %8, %17 : vector<2x4x256xf32>
    %19 = vector.broadcast %1 : vector<1x4x1xf32> to vector<2x4x256xf32>
    %20 = arith.mulf %19, %18 : vector<2x4x256xf32>
    %21 = vector.broadcast %2 : vector<1x4x1xf32> to vector<2x4x256xf32>
    %22 = arith.addf %20, %21 : vector<2x4x256xf32>
    %c0_12 = arith.constant 0 : index
    %c0_13 = arith.constant 0 : index
    %c0_14 = arith.constant 0 : index
    %23 = vector.load %arg5[%c0_12, %c0_13, %c0_14] : memref<2x4x256xf32, #tpu.memory_space<vmem>>, vector<2x4x256xf32>
    tpu.vector_store %arg5[%c0_12, %c0_13, %c0_14], %22 {strides = array<i32>} : memref<2x4x256xf32, #tpu.memory_space<vmem>>, vector<2x4x256xf32>,
    return
  }
  func.func @transform_0(%arg0: i32, %arg1: i32) -> (i32, i32, i32) {
    %c0_i32 = arith.constant 0 : i32
    %c0_i32_0 = arith.constant 0 : i32
    return %arg0, %c0_i32, %arg1 : i32, i32, i32
  }
  func.func @transform_1(%arg0: i32, %arg1: i32) -> (i32, i32, i32) {
    %c0_i32 = arith.constant 0 : i32
    %c0_i32_0 = arith.constant 0 : i32
    %c0_i32_1 = arith.constant 0 : i32
    %c0_i32_2 = arith.constant 0 : i32
    return %c0_i32, %c0_i32_0, %c0_i32_1 : i32, i32, i32
  }
  func.func @transform_2(%arg0: i32, %arg1: i32) -> (i32, i32, i32) {
    %c0_i32 = arith.constant 0 : i32
    %c0_i32_0 = arith.constant 0 : i32
    %c0_i32_1 = arith.constant 0 : i32
    %c0_i32_2 = arith.constant 0 : i32
    return %c0_i32, %c0_i32_0, %c0_i32_1 : i32, i32, i32
  }
  func.func @transform_3(%arg0: i32, %arg1: i32) -> (i32, i32, i32) {
    %c0_i32 = arith.constant 0 : i32
    %c0_i32_0 = arith.constant 0 : i32
    return %arg0, %c0_i32, %arg1 : i32, i32, i32
  }
}

module attributes {stable_mosaic.version = 11 : i64} {
  func.func @_ln_channel_kernel(%arg0: i32, %arg1: i32, %arg2: memref<2x4x256xf32, #tpu.memory_space<vmem>>, %arg3: memref<1x4x1xf32, #tpu.memory_space<vmem>>, %arg4: memref<1x4x1xf32, #tpu.memory_space<vmem>>, %arg5: memref<2x4x256xf32, #tpu.memory_space<vmem>>) attributes {dimension_semantics = [#tpu.dimension_semantics<parallel>, #tpu.dimension_semantics<parallel>], iteration_bounds = array<i64: 1, 1>, scalar_prefetch = 0 : i64, scratch_operands = 0 : i64, tpu.core_type = #tpu.core_type<tc>, window_params = [{transform_indices = @transform_0, window_bounds = array<i64: 2, 4, 256>}, {pipeline_mode = #tpu.pipeline_mode<synchronous>, transform_indices = @transform_1, window_bounds = array<i64: 1, 4, 1>}, {pipeline_mode = #tpu.pipeline_mode<synchronous>, transform_indices = @transform_2, window_bounds = array<i64: 1, 4, 1>}, {transform_indices = @transform_3, window_bounds = array<i64: 2, 4, 256>}]} {
    %c0 = arith.constant 0 : index
    %c0_0 = arith.constant 0 : index
    %c0_1 = arith.constant 0 : index
    %0 = vector.load %arg2[%c0, %c0_0, %c0_1] : memref<2x4x256xf32, #tpu.memory_space<vmem>>, vector<2x4x256xf32>
    %c0_2 = arith.constant 0 : index
    %c0_3 = arith.constant 0 : index
    %c0_4 = arith.constant 0 : index
    %1 = vector.load %arg3[%c0_2, %c0_3, %c0_4] : memref<1x4x1xf32, #tpu.memory_space<vmem>>, vector<1x4x1xf32>
    %c0_5 = arith.constant 0 : index
    %c0_6 = arith.constant 0 : index
    %c0_7 = arith.constant 0 : index
    %2 = vector.load %arg4[%c0_5, %c0_6, %c0_7] : memref<1x4x1xf32, #tpu.memory_space<vmem>>, vector<1x4x1xf32>
    %cst = arith.constant dense<0.000000e+00> : vector<2x256xf32>
    %3 = vector.multi_reduction <add>, %0, %cst [1] : vector<2x4x256xf32> to vector<2x256xf32>
    %4 = vector.shape_cast %3 : vector<2x256xf32> to vector<2x1x256xf32>
    %cst_8 = arith.constant 4.000000e+00 : f32
    %5 = vector.broadcast %cst_8 : f32 to vector<2x1x256xf32>
    %6 = arith.divf %4, %5 : vector<2x1x256xf32>
    %7 = vector.broadcast %6 : vector<2x1x256xf32> to vector<2x4x256xf32>
    %8 = arith.subf %0, %7 : vector<2x4x256xf32>
    %9 = arith.mulf %8, %8 : vector<2x4x256xf32>
    %cst_9 = arith.constant dense<0.000000e+00> : vector<2x256xf32>
    %10 = vector.multi_reduction <add>, %9, %cst_9 [1] : vector<2x4x256xf32> to vector<2x256xf32>
    %11 = vector.shape_cast %10 : vector<2x256xf32> to vector<2x1x256xf32>
    %cst_10 = arith.constant 4.000000e+00 : f32
    %12 = vector.broadcast %cst_10 : f32 to vector<2x1x256xf32>
    %13 = arith.divf %11, %12 : vector<2x1x256xf32>
    %cst_11 = arith.constant 9.99999974E-6 : f32
    %14 = vector.broadcast %cst_11 : f32 to vector<2x1x256xf32>
    %15 = arith.addf %13, %14 : vector<2x1x256xf32>
    %16 = math.rsqrt %15 : vector<2x1x256xf32>
    %17 = vector.broadcast %16 : vector<2x1x256xf32> to vector<2x4x256xf32>
    %18 = arith.mulf %8, %17 : vector<2x4x256xf32>
    %19 = vector.broadcast %1 : vector<1x4x1xf32> to vector<2x4x256xf32>
    %20 = arith.mulf %19, %18 : vector<2x4x256xf32>
    %21 = vector.broadcast %2 : vector<1x4x1xf32> to vector<2x4x256xf32>
    %22 = arith.addf %20, %21 : vector<2x4x256xf32>
    %c0_12 = arith.constant 0 : index
    %c0_13 = arith.constant 0 : index
    %c0_14 = arith.constant 0 : index
    %23 = vector.load %arg5[%c0_12, %c0_13, %c0_14] : memref<2x4x256xf32, #tpu.memory_space<vmem>>, vector<2x4x256xf32>
    tpu.vector_store %arg5[%c0_12, %c0_13, %c0_14], %22 {strides = array<i32>} : memref<2x4x256xf32, #tpu.memory_space<vmem>>, vector<2x4x256xf32>,
    return
  }
  func.func @transform_0(%arg0: i32, %arg1: i32) -> (i32, i32, i32) {
    %c0_i32 = arith.constant 0 : i32
    %c0_i32_0 = arith.constant 0 : i32
    return %arg0, %c0_i32, %arg1 : i32, i32, i32
  }
  func.func @transform_1(%arg0: i32, %arg1: i32) -> (i32, i32, i32) {
    %c0_i32 = arith.constant 0 : i32
    %c0_i32_0 = arith.constant 0 : i32
    %c0_i32_1 = arith.constant 0 : i32
    %c0_i32_2 = arith.constant 0 : i32
    return %c0_i32, %c0_i32_0, %c0_i32_1 : i32, i32, i32
  }
  func.func @transform_2(%arg0: i32, %arg1: i32) -> (i32, i32, i32) {
    %c0_i32 = arith.constant 0 : i32
    %c0_i32_0 = arith.constant 0 : i32
    %c0_i32_1 = arith.constant 0 : i32
    %c0_i32_2 = arith.constant 0 : i32
    return %c0_i32, %c0_i32_0, %c0_i32_1 : i32, i32, i32
  }
  func.func @transform_3(%arg0: i32, %arg1: i32) -> (i32, i32, i32) {
    %c0_i32 = arith.constant 0 : i32
    %c0_i32_0 = arith.constant 0 : i32
    return %arg0, %c0_i32, %arg1 : i32, i32, i32
  }
}

</mosaic_0001>

<bundles_post_ra>
// kernel: tpu_custom_call.1
= control target key start
LH: loop header
LB: loop body
LE: loop exit
PB: predicated region body
PF: predicated region fallthrough
CT: control target
= control target key end

     0   :  { %8 = vsyncpa [#allocation3], 0  ;;  %s303_s0 = inlined_call_operand.hbm [shape: f32[2,4,256], index: 0, kind: input, shape index: {}]   ;;  %s304_s1 = inlined_call_operand.vmem [shape: f32[1,4,1], index: 1, kind: input, shape index: {}]   ;;  %s305_s2 = inlined_call_operand.vmem [shape: f32[1,4,1], index: 2, kind: input, shape index: {}]   ;;  %s306_s3 = inlined_call_operand.hbm [shape: f32[2,4,256], index: 3, kind: output, shape index: {}]  }
   0x1   :  { %9 = vsyncpa [#allocation4], 0  ;;  %s252_s12 = smov [#allocation2]  }
   0x2   :  { %s15_s13 = sshll.u32 %s252_s12, 4  ;;  %s16_s13 = int_to_ptr.vmem [resolvable:$true] %s15_s13 }
   0x3   :  { %s216_s14 = scalar_lea.vmem %s16_s13, 256  ;;  %p221_p1 = scmp.lt.s32.totalorder %s16_s13, %s16_s13 }
   0x4   :  { %p217_p0 = scmp.ne.s32.totalorder %s16_s13, %s216_s14  ;;  %p222_p2 = scmp.lt.s32.totalorder %s216_s14, %s216_s14 }
   0x6   :  { %p223_p3 = por %p222_p2, %p221_p1 }
   0x8   :  { %p224_p4 = pnand %p223_p3, %p217_p0 }
   0xa   :  { %227 = shalt.err (!%p224_p4)
}
   0xb   :  { %s253_s15 = smov 128   ;;  %s254_s16 = smov 8  }
   0xc   :  { %21 = dma.hbm_to_vmem [thread:$0]  %s303_s0, 256, %s16_s13, [#allocation3], %s253_s15, %s253_s15, %s254_s16  }
   0xd   :  { %248 = dma.done.wait [#allocation3], 256  }
   0xe   :  { %249 = vsyncadd [#allocation3], 4294967040  ;;  %v255_v0 = vmov 0   ;;  %v31_v1 = vld [vmem:[%s304_s1] sm:$0xf]  ;;  %v30_v4 = vld [vmem:[#allocation2 + $0x8] sm:$0xff] }
   0xf   :  { %197 = vset.pattern.permute.xlu0 %v255_v0  ;;  %v32_v2 = vld [vmem:[%s305_s2] sm:$0xf]  ;;  %vm39_vm0 = vcmask 1043456   ;;  %v36_v6 = vcombine.high %v30_v4, %v30_v4  ;;  %s256_s0 = smov [#allocation5]  }
  0x10   :  { %143 = vperm.xlu0 %197, %v31_v1   ;;  %v29_v3 = vld [vmem:[#allocation2] sm:$0xff]  ;;  %v54_v9 = vsel %vm39_vm0, %v30_v4, 0.0  ;;  %s180_s1 = sshll.u32 %s256_s0, 4  ;;  %s181_s1 = int_to_ptr.vmem [resolvable:$true] %s180_s1 }
  0x11   :  { %v35_v5 = vcombine.high %v29_v3, %v29_v3  ;;  %v40_v7 = vsel %vm39_vm0, %v29_v3, 0.0  ;;  %v61_v10 = vsel %vm39_vm0, %v36_v6, 0.0  ;;  %v55_v13 = vrot.slane %v54_v9, 4  ;;  %s228_s2 = scalar_lea.vmem %s181_s1, 256  ;;  %p233_p6 = scmp.lt.s32.totalorder %s181_s1, %s181_s1 }
  0x12   :  { %v41_v11 = vrot.slane %v40_v7, 4  ;;  %v62_v14 = vrot.slane %v61_v10, 4  ;;  %p229_p5 = scmp.ne.s32.totalorder %s181_s1, %s228_s2  ;;  %p234_p7 = scmp.lt.s32.totalorder %s228_s2, %s228_s2 }
  0x13   :  { %v47_v8 = vsel %vm39_vm0, %v35_v5, 0.0  ;;  %v56_v17 = vadd.f32 %v55_v13, %v54_v9 }
  0x14   :  { %158 = vperm.xlu0 %197, %v32_v2   ;;  %v48_v12 = vrot.slane %v47_v8, 4  ;;  %v42_v15 = vadd.f32 %v41_v11, %v40_v7  ;;  %v63_v18 = vadd.f32 %v62_v14, %v61_v10  ;;  %p235_p8 = por %p234_p7, %p233_p6 }
  0x15   :  { %v57_v21 = vrot.slane %v56_v17, 2 }
  0x16   :  { %v49_v16 = vadd.f32 %v48_v12, %v47_v8  ;;  %v43_v19 = vrot.slane %v42_v15, 2  ;;  %v64_v22 = vrot.slane %v63_v18, 2  ;;  %p236_p9 = pnand %p235_p8, %p229_p5 }
  0x17   :  { %v58_v25 = vadd.f32 %v57_v21, %v56_v17 }
  0x18   :  { %v50_v20 = vrot.slane %v49_v16, 2  ;;  %v44_v23 = vadd.f32 %v43_v19, %v42_v15  ;;  %v65_v26 = vadd.f32 %v64_v22, %v63_v18 }
  0x19   :  { %v59_v29 = vrot.slane %v58_v25, 1 }
  0x1a   :  { %v51_v24 = vadd.f32 %v50_v20, %v49_v16  ;;  %v45_v27 = vrot.slane %v44_v23, 1  ;;  %v66_v30 = vrot.slane %v65_v26, 1 }
  0x1b   :  { %v60_v33 = vadd.f32 %v59_v29, %v58_v25 }
  0x1c   :  { %v52_v28 = vrot.slane %v51_v24, 1  ;;  %v46_v31 = vadd.f32 %v45_v27, %v44_v23  ;;  %v67_v34 = vadd.f32 %v66_v30, %v65_v26 }
  0x1d   :  { %v71_v37 = vmul.f32 0.25, %v60_v33 }
  0x1e   :  { %v53_v32 = vadd.f32 %v52_v28, %v51_v24  ;;  %v69_v35 = vmul.f32 0.25, %v46_v31  ;;  %v72_v38 = vmul.f32 0.25, %v67_v34 }
  0x20   :  { %v70_v36 = vmul.f32 0.25, %v53_v32  ;;  %v78_v40 = vcombine.low %v71_v37, %v72_v38 }
  0x22   :  { %v77_v39 = vcombine.low %v69_v35, %v70_v36  ;;  %v82_v42 = vsub.f32 %v30_v4, %v78_v40 }
  0x24   :  { %v81_v41 = vsub.f32 %v29_v3, %v77_v39  ;;  %v84_v44 = vmul.f32 %v82_v42, %v82_v42 }
  0x26   :  { %v83_v43 = vmul.f32 %v81_v41, %v81_v41  ;;  %v88_v46 = vcombine.high %v84_v44, %v84_v44  ;;  %v105_v48 = vsel %vm39_vm0, %v84_v44, 0.0 }
  0x27   :  { %v106_v52 = vrot.slane %v105_v48, 4 }
  0x28   :  { %v87_v45 = vcombine.high %v83_v43, %v83_v43  ;;  %v91_v47 = vsel %vm39_vm0, %v83_v43, 0.0  ;;  %v112_v51 = vsel %vm39_vm0, %v88_v46, 0.0 }
  0x29   :  { %v92_v50 = vrot.slane %v91_v47, 4  ;;  %v113_v54 = vrot.slane %v112_v51, 4  ;;  %v107_v56 = vadd.f32 %v106_v52, %v105_v48 }
  0x2a   :  { %v98_v49 = vsel %vm39_vm0, %v87_v45, 0.0 }
  0x2b   :  { %v99_v53 = vrot.slane %v98_v49, 4  ;;  %v93_v55 = vadd.f32 %v92_v50, %v91_v47  ;;  %v114_v58 = vadd.f32 %v113_v54, %v112_v51  ;;  %v108_v60 = vrot.slane %v107_v56, 2 }
  0x2d   :  { %v100_v57 = vadd.f32 %v99_v53, %v98_v49  ;;  %v94_v59 = vrot.slane %v93_v55, 2  ;;  %v115_v62 = vrot.slane %v114_v58, 2  ;;  %v109_v0 = vadd.f32 %v108_v60, %v107_v56 }
  0x2f   :  { %v101_v61 = vrot.slane %v100_v57, 2  ;;  %v95_v63 = vadd.f32 %v94_v59, %v93_v55  ;;  %v116_v2 = vadd.f32 %v115_v62, %v114_v58  ;;  %v110_v4 = vrot.slane %v109_v0, 1 }
  0x31   :  { %v102_v1 = vadd.f32 %v101_v61, %v100_v57  ;;  %v96_v3 = vrot.slane %v95_v63, 1  ;;  %v117_v6 = vrot.slane %v116_v2, 1  ;;  %v111_v8 = vadd.f32 %v110_v4, %v109_v0 }
  0x33   :  { %v103_v5 = vrot.slane %v102_v1, 1  ;;  %v97_v7 = vadd.f32 %v96_v3, %v95_v63  ;;  %v118_v10 = vadd.f32 %v117_v6, %v116_v2  ;;  %v121_v12 = vmul.f32 0.25, %v111_v8 }
  0x35   :  { %v104_v9 = vadd.f32 %v103_v5, %v102_v1  ;;  %v119_v11 = vmul.f32 0.25, %v97_v7  ;;  %v122_v14 = vmul.f32 0.25, %v118_v10  ;;  %v125_v16 = vadd.f32 1e-05, %v121_v12 }
  0x37   :  { %v120_v13 = vmul.f32 0.25, %v104_v9  ;;  %v123_v15 = vadd.f32 1e-05, %v119_v11  ;;  %v126_v18 = vadd.f32 1e-05, %v122_v14 }
  0x39   :  { %v124_v17 = vadd.f32 1e-05, %v120_v13  ;;  %200 = vrsqrt.f32 %v123_v15 }
  0x3a   :  { %202 = vrsqrt.f32 %v125_v16 }
  0x3b   :  { %204 = vrsqrt.f32 %v124_v17 }
  0x3c   :  { %206 = vrsqrt.f32 %v126_v18 }
  0x46   :  { %v201_v19 = vpop.eup %200 }
  0x47   :  { %v203_v20 = vpop.eup %202 }
  0x48   :  { %v205_v21 = vpop.eup %204 }
  0x49   :  { %v207_v22 = vpop.eup %206  ;;  %v135_v23 = vcombine.low %v201_v19, %v205_v21 }
  0x4a   :  { %v136_v24 = vcombine.low %v203_v20, %v207_v22 }
  0x4b   :  { %v139_v25 = vmul.f32 %v135_v23, %v81_v41 }
  0x4c   :  { %v140_v26 = vmul.f32 %v136_v24, %v82_v42 }
  0x4d   :  { %v148_v27 = vcombine.high %v139_v25, %v139_v25 }
  0x4e   :  { %v149_v28 = vcombine.high %v140_v26, %v140_v26 }
  0x8b   :  { %v144_v29 = vpop.permute.xlu0 %143 }
  0x8c   :  { %v152_v30 = vmul.f32 %v144_v29, %v139_v25  ;;  %v153_v31 = vmul.f32 %v148_v27, %v144_v29  ;;  %v154_v32 = vmul.f32 %v144_v29, %v140_v26  ;;  %v155_v33 = vmul.f32 %v149_v28, %v144_v29 }
  0x8f   :  { %v159_v34 = vpop.permute.xlu0 %158 }
  0x90   :  { %v161_v35 = vadd.f32 %v159_v34, %v152_v30  ;;  %v162_v36 = vadd.f32 %v159_v34, %v153_v31  ;;  %v163_v37 = vadd.f32 %v159_v34, %v154_v32  ;;  %v164_v38 = vadd.f32 %v159_v34, %v155_v33 }
  0x92   :  { %v169_v39 = vcombine.low %v161_v35, %v162_v36  ;;  %v170_v40 = vcombine.low %v163_v37, %v164_v38 }
  0x94   :  { %173 = vst [vmem:[#allocation5] sm:$0xff] %v169_v39  ;;  %174 = vst [vmem:[#allocation5 + $0x8] sm:$0xff] %v170_v40 }
  0x95   :  { %239 = shalt.err (!%p236_p9)
}
  0x96   :  { %186 = dma.vmem_to_hbm [thread:$0]  %s181_s1, 256, %s306_s3, [#allocation4], %s253_s15, %s253_s15, %s254_s16  }
  0x97   :  { %250 = dma.done.wait [#allocation4], 256  }
  0x98   :  { %251 = vsyncadd [#allocation4], 4294967040 }
  0x99   :  { %190 = vsyncpa [#allocation3], 1 }
  0x9a   :  { %191 = vsyncpa [#allocation4], 1 }

// kernel: tpu_custom_call.1
= control target key start
LH: loop header
LB: loop body
LE: loop exit
PB: predicated region body
PF: predicated region fallthrough
CT: control target
= control target key end

     0   :  { %8 = vsyncpa [#allocation3], 0  ;;  %s303_s0 = inlined_call_operand.hbm [shape: f32[2,4,256], index: 0, kind: input, shape index: {}]   ;;  %s304_s1 = inlined_call_operand.vmem [shape: f32[1,4,1], index: 1, kind: input, shape index: {}]   ;;  %s305_s2 = inlined_call_operand.vmem [shape: f32[1,4,1], index: 2, kind: input, shape index: {}]   ;;  %s306_s3 = inlined_call_operand.hbm [shape: f32[2,4,256], index: 3, kind: output, shape index: {}]  }
   0x1   :  { %9 = vsyncpa [#allocation4], 0  ;;  %s252_s12 = smov [#allocation2]  }
   0x2   :  { %s15_s13 = sshll.u32 %s252_s12, 4  ;;  %s16_s13 = int_to_ptr.vmem [resolvable:$true] %s15_s13 }
   0x3   :  { %s216_s14 = scalar_lea.vmem %s16_s13, 256  ;;  %p221_p1 = scmp.lt.s32.totalorder %s16_s13, %s16_s13 }
   0x4   :  { %p217_p0 = scmp.ne.s32.totalorder %s16_s13, %s216_s14  ;;  %p222_p2 = scmp.lt.s32.totalorder %s216_s14, %s216_s14 }
   0x6   :  { %p223_p3 = por %p222_p2, %p221_p1 }
   0x8   :  { %p224_p4 = pnand %p223_p3, %p217_p0 }
   0xa   :  { %227 = shalt.err (!%p224_p4)
}
   0xb   :  { %s253_s15 = smov 128   ;;  %s254_s16 = smov 8  }
   0xc   :  { %21 = dma.hbm_to_vmem [thread:$0]  %s303_s0, 256, %s16_s13, [#allocation3], %s253_s15, %s253_s15, %s254_s16  }
   0xd   :  { %248 = dma.done.wait [#allocation3], 256  }
   0xe   :  { %249 = vsyncadd [#allocation3], 4294967040  ;;  %v255_v0 = vmov 0   ;;  %v31_v1 = vld [vmem:[%s304_s1] sm:$0xf]  ;;  %v30_v4 = vld [vmem:[#allocation2 + $0x8] sm:$0xff] }
   0xf   :  { %197 = vset.pattern.permute.xlu0 %v255_v0  ;;  %v32_v2 = vld [vmem:[%s305_s2] sm:$0xf]  ;;  %vm39_vm0 = vcmask 1043456   ;;  %v36_v6 = vcombine.high %v30_v4, %v30_v4  ;;  %s256_s0 = smov [#allocation5]  }
  0x10   :  { %143 = vperm.xlu0 %197, %v31_v1   ;;  %v29_v3 = vld [vmem:[#allocation2] sm:$0xff]  ;;  %v54_v9 = vsel %vm39_vm0, %v30_v4, 0.0  ;;  %s180_s1 = sshll.u32 %s256_s0, 4  ;;  %s181_s1 = int_to_ptr.vmem [resolvable:$true] %s180_s1 }
  0x11   :  { %v35_v5 = vcombine.high %v29_v3, %v29_v3  ;;  %v40_v7 = vsel %vm39_vm0, %v29_v3, 0.0  ;;  %v61_v10 = vsel %vm39_vm0, %v36_v6, 0.0  ;;  %v55_v13 = vrot.slane %v54_v9, 4  ;;  %s228_s2 = scalar_lea.vmem %s181_s1, 256  ;;  %p233_p6 = scmp.lt.s32.totalorder %s181_s1, %s181_s1 }
  0x12   :  { %v41_v11 = vrot.slane %v40_v7, 4  ;;  %v62_v14 = vrot.slane %v61_v10, 4  ;;  %p229_p5 = scmp.ne.s32.totalorder %s181_s1, %s228_s2  ;;  %p234_p7 = scmp.lt.s32.totalorder %s228_s2, %s228_s2 }
  0x13   :  { %v47_v8 = vsel %vm39_vm0, %v35_v5, 0.0  ;;  %v56_v17 = vadd.f32 %v55_v13, %v54_v9 }
  0x14   :  { %158 = vperm.xlu0 %197, %v32_v2   ;;  %v48_v12 = vrot.slane %v47_v8, 4  ;;  %v42_v15 = vadd.f32 %v41_v11, %v40_v7  ;;  %v63_v18 = vadd.f32 %v62_v14, %v61_v10  ;;  %p235_p8 = por %p234_p7, %p233_p6 }
  0x15   :  { %v57_v21 = vrot.slane %v56_v17, 2 }
  0x16   :  { %v49_v16 = vadd.f32 %v48_v12, %v47_v8  ;;  %v43_v19 = vrot.slane %v42_v15, 2  ;;  %v64_v22 = vrot.slane %v63_v18, 2  ;;  %p236_p9 = pnand %p235_p8, %p229_p5 }
  0x17   :  { %v58_v25 = vadd.f32 %v57_v21, %v56_v17 }
  0x18   :  { %v50_v20 = vrot.slane %v49_v16, 2  ;;  %v44_v23 = vadd.f32 %v43_v19, %v42_v15  ;;  %v65_v26 = vadd.f32 %v64_v22, %v63_v18 }
  0x19   :  { %v59_v29 = vrot.slane %v58_v25, 1 }
  0x1a   :  { %v51_v24 = vadd.f32 %v50_v20, %v49_v16  ;;  %v45_v27 = vrot.slane %v44_v23, 1  ;;  %v66_v30 = vrot.slane %v65_v26, 1 }
  0x1b   :  { %v60_v33 = vadd.f32 %v59_v29, %v58_v25 }
  0x1c   :  { %v52_v28 = vrot.slane %v51_v24, 1  ;;  %v46_v31 = vadd.f32 %v45_v27, %v44_v23  ;;  %v67_v34 = vadd.f32 %v66_v30, %v65_v26 }
  0x1d   :  { %v71_v37 = vmul.f32 0.25, %v60_v33 }
  0x1e   :  { %v53_v32 = vadd.f32 %v52_v28, %v51_v24  ;;  %v69_v35 = vmul.f32 0.25, %v46_v31  ;;  %v72_v38 = vmul.f32 0.25, %v67_v34 }
  0x20   :  { %v70_v36 = vmul.f32 0.25, %v53_v32  ;;  %v78_v40 = vcombine.low %v71_v37, %v72_v38 }
  0x22   :  { %v77_v39 = vcombine.low %v69_v35, %v70_v36  ;;  %v82_v42 = vsub.f32 %v30_v4, %v78_v40 }
  0x24   :  { %v81_v41 = vsub.f32 %v29_v3, %v77_v39  ;;  %v84_v44 = vmul.f32 %v82_v42, %v82_v42 }
  0x26   :  { %v83_v43 = vmul.f32 %v81_v41, %v81_v41  ;;  %v88_v46 = vcombine.high %v84_v44, %v84_v44  ;;  %v105_v48 = vsel %vm39_vm0, %v84_v44, 0.0 }
  0x27   :  { %v106_v52 = vrot.slane %v105_v48, 4 }
  0x28   :  { %v87_v45 = vcombine.high %v83_v43, %v83_v43  ;;  %v91_v47 = vsel %vm39_vm0, %v83_v43, 0.0  ;;  %v112_v51 = vsel %vm39_vm0, %v88_v46, 0.0 }
  0x29   :  { %v92_v50 = vrot.slane %v91_v47, 4  ;;  %v113_v54 = vrot.slane %v112_v51, 4  ;;  %v107_v56 = vadd.f32 %v106_v52, %v105_v48 }
  0x2a   :  { %v98_v49 = vsel %vm39_vm0, %v87_v45, 0.0 }
  0x2b   :  { %v99_v53 = vrot.slane %v98_v49, 4  ;;  %v93_v55 = vadd.f32 %v92_v50, %v91_v47  ;;  %v114_v58 = vadd.f32 %v113_v54, %v112_v51  ;;  %v108_v60 = vrot.slane %v107_v56, 2 }
  0x2d   :  { %v100_v57 = vadd.f32 %v99_v53, %v98_v49  ;;  %v94_v59 = vrot.slane %v93_v55, 2  ;;  %v115_v62 = vrot.slane %v114_v58, 2  ;;  %v109_v0 = vadd.f32 %v108_v60, %v107_v56 }
  0x2f   :  { %v101_v61 = vrot.slane %v100_v57, 2  ;;  %v95_v63 = vadd.f32 %v94_v59, %v93_v55  ;;  %v116_v2 = vadd.f32 %v115_v62, %v114_v58  ;;  %v110_v4 = vrot.slane %v109_v0, 1 }
  0x31   :  { %v102_v1 = vadd.f32 %v101_v61, %v100_v57  ;;  %v96_v3 = vrot.slane %v95_v63, 1  ;;  %v117_v6 = vrot.slane %v116_v2, 1  ;;  %v111_v8 = vadd.f32 %v110_v4, %v109_v0 }
  0x33   :  { %v103_v5 = vrot.slane %v102_v1, 1  ;;  %v97_v7 = vadd.f32 %v96_v3, %v95_v63  ;;  %v118_v10 = vadd.f32 %v117_v6, %v116_v2  ;;  %v121_v12 = vmul.f32 0.25, %v111_v8 }
  0x35   :  { %v104_v9 = vadd.f32 %v103_v5, %v102_v1  ;;  %v119_v11 = vmul.f32 0.25, %v97_v7  ;;  %v122_v14 = vmul.f32 0.25, %v118_v10  ;;  %v125_v16 = vadd.f32 1e-05, %v121_v12 }
  0x37   :  { %v120_v13 = vmul.f32 0.25, %v104_v9  ;;  %v123_v15 = vadd.f32 1e-05, %v119_v11  ;;  %v126_v18 = vadd.f32 1e-05, %v122_v14 }
  0x39   :  { %v124_v17 = vadd.f32 1e-05, %v120_v13  ;;  %200 = vrsqrt.f32 %v123_v15 }
  0x3a   :  { %202 = vrsqrt.f32 %v125_v16 }
  0x3b   :  { %204 = vrsqrt.f32 %v124_v17 }
  0x3c   :  { %206 = vrsqrt.f32 %v126_v18 }
  0x46   :  { %v201_v19 = vpop.eup %200 }
  0x47   :  { %v203_v20 = vpop.eup %202 }
  0x48   :  { %v205_v21 = vpop.eup %204 }
  0x49   :  { %v207_v22 = vpop.eup %206  ;;  %v135_v23 = vcombine.low %v201_v19, %v205_v21 }
  0x4a   :  { %v136_v24 = vcombine.low %v203_v20, %v207_v22 }
  0x4b   :  { %v139_v25 = vmul.f32 %v135_v23, %v81_v41 }
  0x4c   :  { %v140_v26 = vmul.f32 %v136_v24, %v82_v42 }
  0x4d   :  { %v148_v27 = vcombine.high %v139_v25, %v139_v25 }
  0x4e   :  { %v149_v28 = vcombine.high %v140_v26, %v140_v26 }
  0x8b   :  { %v144_v29 = vpop.permute.xlu0 %143 }
  0x8c   :  { %v152_v30 = vmul.f32 %v144_v29, %v139_v25  ;;  %v153_v31 = vmul.f32 %v148_v27, %v144_v29  ;;  %v154_v32 = vmul.f32 %v144_v29, %v140_v26  ;;  %v155_v33 = vmul.f32 %v149_v28, %v144_v29 }
  0x8f   :  { %v159_v34 = vpop.permute.xlu0 %158 }
  0x90   :  { %v161_v35 = vadd.f32 %v159_v34, %v152_v30  ;;  %v162_v36 = vadd.f32 %v159_v34, %v153_v31  ;;  %v163_v37 = vadd.f32 %v159_v34, %v154_v32  ;;  %v164_v38 = vadd.f32 %v159_v34, %v155_v33 }
  0x92   :  { %v169_v39 = vcombine.low %v161_v35, %v162_v36  ;;  %v170_v40 = vcombine.low %v163_v37, %v164_v38 }
  0x94   :  { %173 = vst [vmem:[#allocation5] sm:$0xff] %v169_v39  ;;  %174 = vst [vmem:[#allocation5 + $0x8] sm:$0xff] %v170_v40 }
  0x95   :  { %239 = shalt.err (!%p236_p9)
}
  0x96   :  { %186 = dma.vmem_to_hbm [thread:$0]  %s181_s1, 256, %s306_s3, [#allocation4], %s253_s15, %s253_s15, %s254_s16  }
  0x97   :  { %250 = dma.done.wait [#allocation4], 256  }
  0x98   :  { %251 = vsyncadd [#allocation4], 4294967040 }
  0x99   :  { %190 = vsyncpa [#allocation3], 1 }
  0x9a   :  { %191 = vsyncpa [#allocation4], 1 }

</bundles_post_ra>
